<compile_context>
chip_gen: v5e
topology: v5e:2x2
jax: 0.10.0
libtpu: 0.0.40
codegen_flags: <defaults>
</compile_context>

<pallas_src>
import functools

import jax
import jax.numpy as jnp
from jax import lax
from jax.experimental import pallas as pl
from jax.experimental.pallas import tpu as pltpu


def _round_up(x, m):
    return (x + m - 1) // m * m


def _round_down(x, m):
    return x // m * m


def _cdiv(a, b):
    return (a + b - 1) // b


def _weighted_ce_loss_kernel(logits_ref, labels_ref, wrow_ref, out_ref, *, batch):
    """One batch tile: per-row CE * per-row weight, partial sum to out_ref."""
    logits = logits_ref[...].astype(jnp.float32)      # [TB, C]  (upcast in-kernel)
    labels = labels_ref[...]                          # [TB, 1]  int32 (0 on pad rows)
    wrow = wrow_ref[...].astype(jnp.float32)          # [TB, 1]  f32   (0 on pad rows)

    tb, c = logits.shape

    # Rows past the true batch (partial edge block) hold undefined data; force
    # them to a large-negative *finite* value BEFORE the max / log-sum-exp so
    # no inf/NaN can be produced downstream.
    row = pl.program_id(0) * tb + lax.broadcasted_iota(jnp.int32, (tb, 1), 0)
    logits = jnp.where(row < batch, logits, -1e30)

    # Numerically-stable log-sum-exp and label pick (no one-hot materialized).
    col = lax.broadcasted_iota(jnp.int32, (tb, c), 1)
    hit = col == labels                                                       # [TB,C]
    m = jnp.max(logits, axis=-1, keepdims=True)                               # [TB,1]
    lse = m + jnp.log(jnp.sum(jnp.exp(logits - m), axis=-1, keepdims=True))   # [TB,1]
    picked = jnp.sum(jnp.where(hit, logits, 0.0), axis=-1, keepdims=True)     # [TB,1]

    # wrow is zero on padded rows -> they contribute nothing to the sum.
    psum = jnp.sum((lse - picked) * wrow)             # scalar partial sum for this tile
    out_ref[...] = jnp.broadcast_to(psum, out_ref.shape).astype(jnp.float32)


def loss_forward(y_pred, y, class_frequencies=None, *, model=None,
                 target_block_bytes=8 << 20):
    """Equivalent of Loss.forward (model arg unused). Returns the loss dict."""
    del model
    B, C = y_pred.shape
    itemsize = jnp.dtype(y_pred.dtype).itemsize

    # Glue: derive integer class indices (handles one-hot targets too).
    if y.ndim == 2:
        labels = jnp.argmax(y, axis=1).astype(jnp.int32)
    else:
        labels = y.astype(jnp.int32)

    # Per-sample multiplicative factor; gather + normalization hoisted out of
    # the kernel (length-B gather is negligible HBM traffic).
    if class_frequencies is None:
        w_row = jnp.ones((B,), dtype=jnp.float32)
    else:
        inv = 1.0 / class_frequencies.astype(jnp.float32)
        w_row = inv[labels] / jnp.sum(inv)

    # ---- generation-aware tile sizing / VMEM budget ----
    try:
        vmem_cap = int(pltpu.get_tpu_info().vmem_capacity_bytes)
    except Exception:
        vmem_cap = 64 << 20                       # conservative (v7x) default
    vmem_budget = min(int(vmem_cap * 3 // 4), 100 << 20)

    # Per-row VMEM cost: double-buffered logits tile + ~3 f32 temporaries of
    # the same footprint + two lane-padded (x,1) side inputs (double-buffered).
    bytes_per_row = 2 * C * itemsize + 3 * C * 4 + 2 * 2 * 128 * 4
    tb_vmem = max(_round_down((vmem_budget - (4 << 20)) // bytes_per_row, 8), 8)
    tb_target = max(_round_down(target_block_bytes // max(C * itemsize, 1), 8), 8)
    tb = min(tb_vmem, tb_target, _round_up(B, 8))
    if B >= 16:
        # Keep >= 2 blocks so both v7x TensorCores get work ("parallel" axis).
        tb = min(tb, _round_up(_cdiv(B, 2), 8))
    tb = max(tb, 8)

    num_blocks = _cdiv(B, tb)
    b_pad = num_blocks * tb

    # Big logits tensor ships un-padded; only the tiny side inputs are padded.
    if num_blocks == 1 and b_pad != B:
        # Single partial block: pad the <8 missing rows so the block never
        # exceeds the array (negligible traffic).
        logits_in = jnp.pad(y_pred, ((0, b_pad - B), (0, 0)))
    else:
        logits_in = y_pred
    labels2d = jnp.pad(labels, (0, b_pad - B)).reshape(b_pad, 1)
    w_row2d = jnp.pad(w_row, (0, b_pad - B)).reshape(b_pad, 1)

    vmem_limit = int(min(max(tb * bytes_per_row + (8 << 20), 32 << 20), vmem_budget))

    kernel = functools.partial(_weighted_ce_loss_kernel, batch=B)

    partials = pl.pallas_call(
        kernel,
        out_shape=jax.ShapeDtypeStruct((num_blocks, 8, 128), jnp.float32),
        grid=(num_blocks,),
        in_specs=[
            pl.BlockSpec((tb, C), lambda i: (i, 0)),   # logits tile (native dtype)
            pl.BlockSpec((tb, 1), lambda i: (i, 0)),   # labels tile
            pl.BlockSpec((tb, 1), lambda i: (i, 0)),   # per-row weights
        ],
        out_specs=pl.BlockSpec((1, 8, 128), lambda i: (i, 0, 0)),
        compiler_params=pltpu.CompilerParams(
            dimension_semantics=("parallel",),
            vmem_limit_bytes=vmem_limit,
        ),
    )(logits_in, labels2d, w_row2d)

    loss = jnp.sum(partials[:, 0, 0]) / jnp.float32(B)
    return {"loss_batch": loss, "loss_task": loss}


def _reference(y_pred, y, class_frequencies=None):
    """Plain-JAX reference mirroring the PyTorch module (for validation)."""
    logits = y_pred.astype(jnp.float32)
    if y.ndim == 2:
        class_idx = jnp.argmax(y, axis=1)
    else:
        class_idx = y.astype(jnp.int32)
    logp = jax.nn.log_softmax(logits, axis=-1)
    loss_task = -jnp.take_along_axis(logp, class_idx[:, None], axis=1)[:, 0]
    if class_frequencies is not None:
        cf = class_frequencies.astype(jnp.float32)
        w = 1.0 / cf[class_idx]
        loss_task = loss_task * (w / jnp.sum(1.0 / cf))
    return jnp.mean(loss_task)


if __name__ == "__main__":
    key = jax.random.PRNGKey(0)
    k1, k2, k3, k4, k5, k6 = jax.random.split(key, 6)

    # --- small shapes consistent with the module (classification head) ---
    B, C = 8, 32
    y_pred = jax.random.normal(k1, (B, C), dtype=jnp.float32)
    y = jax.random.randint(k2, (B,), 0, C, dtype=jnp.int32)
    class_frequencies = jax.random.uniform(k3, (C,), minval=0.1, maxval=1.0,
                                           dtype=jnp.float32)

    # Weighted, f32
    out = loss_forward(y_pred, y, class_frequencies)
    jax.block_until_ready(out["loss_batch"])
    ref = _reference(y_pred, y, class_frequencies)
    assert jnp.allclose(out["loss_batch"], ref, rtol=1e-5, atol=1e-5)

    # Unweighted, f32
    out2 = loss_forward(y_pred, y, None)
    jax.block_until_ready(out2["loss_batch"])
    ref2 = _reference(y_pred, y, None)
    assert jnp.allclose(out2["loss_batch"], ref2, rtol=1e-5, atol=1e-5)

    # Weighted, bf16 logits (native dtype shipped straight to the kernel)
    y_pred_bf16 = y_pred.astype(jnp.bfloat16)
    out3 = loss_forward(y_pred_bf16, y, class_frequencies)
    jax.block_until_ready(out3["loss_batch"])
    ref3 = _reference(y_pred_bf16, y, class_frequencies)
    assert jnp.allclose(out3["loss_batch"], ref3, rtol=1e-5, atol=1e-5)

    # One-hot targets (y.ndim == 2 path)
    y_onehot = jax.nn.one_hot(y, C, dtype=jnp.float32)
    out3b = loss_forward(y_pred, y_onehot, class_frequencies)
    jax.block_until_ready(out3b["loss_batch"])
    assert jnp.allclose(out3b["loss_batch"], ref, rtol=1e-5, atol=1e-5)

    # Ragged, multi-block grid (exercises partial edge block + row masking,
    # class dim not a multiple of 128, and both-TC split on v7x)
    B2, C2 = 300, 200
    y_pred_l = jax.random.normal(k4, (B2, C2), dtype=jnp.float32)
    y_l = jax.random.randint(k5, (B2,), 0, C2, dtype=jnp.int32)
    cf_l = jax.random.uniform(k6, (C2,), minval=0.1, maxval=1.0, dtype=jnp.float32)
    out4 = loss_forward(y_pred_l, y_l, cf_l)
    jax.block_until_ready(out4["loss_batch"])
    ref4 = _reference(y_pred_l, y_l, cf_l)
    assert jnp.allclose(out4["loss_batch"], ref4, rtol=1e-5, atol=1e-5)

    print("KERNEL_OK")
</pallas_src>

<mosaic_0001>
module attributes {stable_mosaic.version = 11 : i64} {
  func.func @_weighted_ce_loss_kernel(%arg0: i32, %arg1: memref<8x32xf32, #tpu.memory_space<vmem>>, %arg2: memref<8x1xi32, #tpu.memory_space<vmem>>, %arg3: memref<8x1xf32, #tpu.memory_space<vmem>>, %arg4: memref<1x8x128xf32, #tpu.memory_space<vmem>>) attributes {dimension_semantics = [#tpu.dimension_semantics<parallel>], iteration_bounds = array<i64: 1>, scalar_prefetch = 0 : i64, scratch_operands = 0 : i64, tpu.core_type = #tpu.core_type<tc>, window_params = [{transform_indices = @transform_0, window_bounds = array<i64: 8, 32>}, {transform_indices = @transform_1, window_bounds = array<i64: 8, 1>}, {transform_indices = @transform_2, window_bounds = array<i64: 8, 1>}, {transform_indices = @transform_3, window_bounds = array<i64: 1, 8, 128>}]} {
    %c0 = arith.constant 0 : index
    %c0_0 = arith.constant 0 : index
    %0 = vector.load %arg1[%c0, %c0_0] : memref<8x32xf32, #tpu.memory_space<vmem>>, vector<8x32xf32>
    %c0_1 = arith.constant 0 : index
    %c0_2 = arith.constant 0 : index
    %1 = vector.load %arg2[%c0_1, %c0_2] : memref<8x1xi32, #tpu.memory_space<vmem>>, vector<8x1xi32>
    %c0_3 = arith.constant 0 : index
    %c0_4 = arith.constant 0 : index
    %2 = vector.load %arg3[%c0_3, %c0_4] : memref<8x1xf32, #tpu.memory_space<vmem>>, vector<8x1xf32>
    %c8_i32 = arith.constant 8 : i32
    %3 = arith.muli %arg0, %c8_i32 : i32
    %4 = tpu.iota {dimensions = array<i32: 0>} : vector<8x1xi32>
    %5 = vector.broadcast %3 : i32 to vector<8x1xi32>
    %6 = arith.addi %5, %4 : vector<8x1xi32>
    %c8_i32_5 = arith.constant 8 : i32
    %7 = vector.broadcast %c8_i32_5 : i32 to vector<8x1xi32>
    %8 = arith.cmpi slt, %6, %7 : vector<8x1xi32>
    %cst = arith.constant -1.000000e+30 : f32
    %9 = vector.shape_cast %8 : vector<8x1xi1> to vector<8x1xi1>
    %10 = vector.broadcast %9 : vector<8x1xi1> to vector<8x32xi1>
    %11 = vector.broadcast %cst : f32 to vector<8x32xf32>
    %12 = arith.select %10, %0, %11 : vector<8x32xi1>, vector<8x32xf32>
    %13 = tpu.iota {dimensions = array<i32: 1>} : vector<8x32xi32>
    %14 = vector.broadcast %1 : vector<8x1xi32> to vector<8x32xi32>
    %15 = arith.cmpi eq, %13, %14 : vector<8x32xi32>
    %cst_6 = arith.constant dense<0xFF800000> : vector<8xf32>
    %16 = vector.multi_reduction <maximumf>, %12, %cst_6 [1] : vector<8x32xf32> to vector<8xf32>
    %17 = vector.shape_cast %16 : vector<8xf32> to vector<8x1xf32>
    %18 = vector.broadcast %17 : vector<8x1xf32> to vector<8x32xf32>
    %19 = arith.subf %12, %18 : vector<8x32xf32>
    %20 = math.exp %19 : vector<8x32xf32>
    %cst_7 = arith.constant dense<0.000000e+00> : vector<8xf32>
    %21 = vector.multi_reduction <add>, %20, %cst_7 [1] : vector<8x32xf32> to vector<8xf32>
    %22 = vector.shape_cast %21 : vector<8xf32> to vector<8x1xf32>
    %23 = math.log %22 : vector<8x1xf32>
    %24 = arith.addf %17, %23 : vector<8x1xf32>
    %cst_8 = arith.constant 0.000000e+00 : f32
    %25 = vector.broadcast %cst_8 : f32 to vector<8x32xf32>
    %26 = arith.select %15, %12, %25 : vector<8x32xi1>, vector<8x32xf32>
    %cst_9 = arith.constant dense<0.000000e+00> : vector<8xf32>
    %27 = vector.multi_reduction <add>, %26, %cst_9 [1] : vector<8x32xf32> to vector<8xf32>
    %28 = vector.shape_cast %27 : vector<8xf32> to vector<8x1xf32>
    %29 = arith.subf %24, %28 : vector<8x1xf32>
    %30 = arith.mulf %29, %2 : vector<8x1xf32>
    %31 = vector.shape_cast %30 : vector<8x1xf32> to vector<1x8x1xf32>
    %cst_10 = arith.constant dense<0.000000e+00> : vector<1xf32>
    %32 = vector.multi_reduction <add>, %31, %cst_10 [1, 2] : vector<1x8x1xf32> to vector<1xf32>
    %33 = vector.shape_cast %32 : vector<1xf32> to vector<1x1x1xf32>
    %34 = vector.extract %33[0, 0, 0] : f32 from vector<1x1x1xf32>
    %35 = vector.broadcast %34 : f32 to vector<1x8x128xf32>
    %c0_11 = arith.constant 0 : index
    %c0_12 = arith.constant 0 : index
    %c0_13 = arith.constant 0 : index
    %36 = vector.load %arg4[%c0_11, %c0_12, %c0_13] : memref<1x8x128xf32, #tpu.memory_space<vmem>>, vector<1x8x128xf32>
    tpu.vector_store %arg4[%c0_11, %c0_12, %c0_13], %35 {strides = array<i32>} : memref<1x8x128xf32, #tpu.memory_space<vmem>>, vector<1x8x128xf32>,
    return
  }
  func.func @transform_0(%arg0: i32) -> (i32, i32) {
    %c0_i32 = arith.constant 0 : i32
    %c0_i32_0 = arith.constant 0 : i32
    return %arg0, %c0_i32 : i32, i32
  }
  func.func @transform_1(%arg0: i32) -> (i32, i32) {
    %c0_i32 = arith.constant 0 : i32
    %c0_i32_0 = arith.constant 0 : i32
    return %arg0, %c0_i32 : i32, i32
  }
  func.func @transform_2(%arg0: i32) -> (i32, i32) {
    %c0_i32 = arith.constant 0 : i32
    %c0_i32_0 = arith.constant 0 : i32
    return %arg0, %c0_i32 : i32, i32
  }
  func.func @transform_3(%arg0: i32) -> (i32, i32, i32) {
    %c0_i32 = arith.constant 0 : i32
    %c0_i32_0 = arith.constant 0 : i32
    %c0_i32_1 = arith.constant 0 : i32
    return %arg0, %c0_i32, %c0_i32_0 : i32, i32, i32
  }
}

</mosaic_0001>

<bundles_post_ra>
// kernel: tpu_custom_call.1
= control target key start
LH: loop header
LB: loop body
LE: loop exit
PB: predicated region body
PF: predicated region fallthrough
CT: control target
= control target key end

     0   :  { %vm33_vm0 = vcmask 261120   ;;  %s153_s0 = inlined_call_operand.vmem [shape: f32[8,32], index: 0, kind: input, shape index: {}]   ;;  %s154_s1 = inlined_call_operand.vmem [shape: s32[8,1], index: 1, kind: input, shape index: {}]   ;;  %s155_s2 = inlined_call_operand.vmem [shape: f32[8,1], index: 2, kind: input, shape index: {}]   ;;  %s156_s3 = inlined_call_operand.hbm [shape: f32[1,8,128], index: 3, kind: output, shape index: {}]  }
   0x1   :  { %v15_v0 = vld [vmem:[%s153_s0] sm:$0xff] }
   0x2   :  { %8 = vsyncpa [#allocation3], 0  ;;  %v34_v1 = vsel %vm33_vm0, %v15_v0, -inf  ;;  %v116_v2 = vmov 0   ;;  %v16_v3 = vld [vmem:[%s154_s1] sm:$0xff]  ;;  %v27_v9 = vlaneseq  ;;  %vm52_vm2 = vcmask 7168  }
   0x3   :  { %85 = vset.pattern.permute.xlu0 %v116_v2  ;;  %v17_v19 = vld [vmem:[%s155_s2] sm:$0xff]  ;;  %s117_s16 = smov [#allocation2]   ;;  %s72_s20 = sshll.u32 %s156_s3, 4  ;;  %s73_s20 = int_to_ptr.hbm [resolvable:$true] %s72_s20 }
   0x4   :  { %35 = vmax.xlane.f32.xlu0 %v34_v1  ;;  %v28_v10 = vand.u32 127, %v27_v9  ;;  %s70_s17 = sshll.u32 %s117_s16, 4  ;;  %s71_s17 = int_to_ptr.vmem [resolvable:$true] %s70_s17 }
  0x18   :  { %30 = vperm.xlu0 %85, %v16_v3  }
  0x77   :  { %v36_v4 = vpop.xlane.xlu0 %35 }
  0x78   :  { %v37_v5 = vsub.f32 %v15_v0, %v36_v4 }
  0x7a   :  { %v38_v6 = vmul.f32 1.442695, %v37_v5 }
  0x7c   :  { %86 = vpow2.f32 %v38_v6 }
  0x82   :  { %v87_v7 = vpop.eup %86 }
  0x83   :  { %v40_v8 = vsel %vm33_vm0, %v87_v7, 0.0 }
  0x84   :  { %41 = vadd.xlane.f32.xlu1 %v40_v8 }
  0x8a   :  { %v31_v11 = vpop.permute.xlu0 %30 }
  0x8b   :  { %vm32_vm1 = vcmp.eq.s32.totalorder %v28_v10, %v31_v11 }
  0x8c   :  { %v46_v12 = vsel %vm32_vm1, %v15_v0, 0.0 }
  0x8d   :  { %v47_v13 = vsel %vm33_vm0, %v46_v12, 0.0 }
  0x8e   :  { %48 = vadd.xlane.f32.xlu1 %v47_v13 }
  0xf7   :  { %v42_v14 = vpop.xlane.xlu1 %41 }
  0xf8   :  { %88 = vlog2.f32 %v42_v14 }
  0xfe   :  { %v89_v15 = vpop.eup %88 }
  0xff   :  { %v44_v16 = vmul.f32 0.6931472, %v89_v15 }
 0x101   :  { %v45_v17 = vadd.f32 %v44_v16, %v36_v4  ;;  %v49_v18 = vpop.xlane.xlu1 %48 }
 0x103   :  { %v50_v20 = vsub.f32 %v45_v17, %v49_v18 }
 0x105   :  { %v51_v21 = vmul.f32 %v50_v20, %v17_v19 }
 0x107   :  { %v53_v22 = vsel %vm52_vm2, %v51_v21, 0.0 }
 0x108   :  { %54 = vadd.xlane.f32.xlu2 %v53_v22 }
 0x17b   :  { %v55_v23 = vpop.xlane.xlu2 %54 }
 0x17c   :  { %v56_v24 = vrot.slane %v55_v23, 4 }
 0x17e   :  { %v57_v25 = vadd.f32 %v56_v24, %v55_v23 }
 0x180   :  { %v58_v26 = vrot.slane %v57_v25, 2 }
 0x182   :  { %v59_v27 = vadd.f32 %v58_v26, %v57_v25 }
 0x184   :  { %v60_v28 = vrot.slane %v59_v27, 1 }
 0x186   :  { %v61_v29 = vadd.f32 %v60_v28, %v59_v27 }
 0x188   :  { %81 = vpush %v61_v29 }
 0x1b9   :  { %s82_s2 = spop %81 }
 0x1ba   :  { %v63_v30 = vstv %s82_s2 }
 0x1bb   :  { %64 = vst [vmem:[#allocation2] sm:$0xff] %v63_v30 }
 0x1bc   :  { %75 = dma.vmem_to_hbm [thread:$0]  %s71_s17, 128, %s73_s20, [#allocation3]  }
 0x1bd   :  { %114 = dma.done.wait [#allocation3], 128  }
 0x1be   :  { %115 = vsyncadd [#allocation3], 4294967168 }
 0x1bf   :  { %80 = vsyncpa [#allocation3], 1 }

</bundles_post_ra>
